<compile_context>
chip_gen: v6e
topology: v6e:2x2x1
jax: 0.10.0
libtpu: 0.0.40
codegen_flags: <defaults>
</compile_context>

<pallas_src>
import jax
import jax.numpy as jnp
from jax.experimental import pallas as pl
from jax.experimental.pallas import tpu as pltpu


def _round_up(x, m):
    return ((x + m - 1) // m) * m


def _word2vec_kernel(x_ref, w1_ref, b1_ref, w2_ref, b2_ref, out_ref):
    # x_ref : (TB, 1) f32    w1_ref: (1, E) f32    b1_ref: (1, E) f32
    # w2_ref: (E, TV) f32    b2_ref: (1, TV) f32   out_ref: (TB, TV) f32
    #
    # Layer 1 (Linear(1, E)): a K=1 contraction is an outer product ->
    # broadcast FMA on the VPU; keeps the MXU free for the real matmul.
    emb = x_ref[...] * w1_ref[...] + b1_ref[...]                  # (TB, E) f32
    # Layer 2 (Linear(E, V)): the only real matmul -> MXU, f32 accumulation.
    scores = jnp.dot(emb, w2_ref[...],
                     preferred_element_type=jnp.float32)          # (TB, TV)
    out_ref[...] = (scores + b2_ref[...]).astype(out_ref.dtype)


def word2vec_forward(x, w1, b1, w2, b2, *, tb=128, tv=512):
    """Fused forward: (x @ w1 + b1) @ w2 + b2.

    x : (B, 1) f32   w1: (1, E) f32   b1: (1, E) f32
    w2: (E, V) f32   b2: (1, V) f32
    returns (B, V) f32
    """
    B = x.shape[0]
    E = w1.shape[1]
    V = w2.shape[1]
    assert w2.shape[0] == E and b1.shape == (1, E) and b2.shape == (1, V)

    # Batch tile: multiple of 8 (sublanes).  Vocab tile: multiple of 128
    # (lane-dense output stores).
    tb = min(tb, _round_up(B, 8))
    tv = min(tv, _round_up(V, 128))

    # Pad ragged edges so the grid divides evenly; slice the result back.
    Bp = _round_up(B, tb)
    Vp = _round_up(V, tv)
    if Bp != B:
        x = jnp.pad(x, ((0, Bp - B), (0, 0)))
    if Vp != V:
        w2 = jnp.pad(w2, ((0, 0), (0, Vp - V)))
        b2 = jnp.pad(b2, ((0, 0), (0, Vp - V)))

    grid = (Bp // tb, Vp // tv)

    # Per-step VMEM budget (double-buffered inputs/outputs) + headroom,
    # clamped to a range that is valid on v5e/v6e/v7x.
    w2_bytes = E * tv * 4
    out_bytes = tb * tv * 4
    small = tb * 4 + 2 * E * 4 + tv * 4
    vmem_limit = int(min(max(2 * (w2_bytes + out_bytes + small) + (2 << 20),
                             16 << 20), 48 << 20))

    out = pl.pallas_call(
        _word2vec_kernel,
        out_shape=jax.ShapeDtypeStruct((Bp, Vp), jnp.float32),
        grid_spec=pltpu.PrefetchScalarGridSpec(
            num_scalar_prefetch=0,
            grid=grid,
            in_specs=[
                pl.BlockSpec((tb, 1), lambda i, j: (i, 0)),   # x
                pl.BlockSpec((1, E), lambda i, j: (0, 0)),    # w1
                pl.BlockSpec((1, E), lambda i, j: (0, 0)),    # b1
                pl.BlockSpec((E, tv), lambda i, j: (0, j)),   # w2
                pl.BlockSpec((1, tv), lambda i, j: (0, j)),   # b2
            ],
            out_specs=pl.BlockSpec((tb, tv), lambda i, j: (i, j)),
        ),
        compiler_params=pltpu.CompilerParams(
            dimension_semantics=("parallel", "parallel"),
            vmem_limit_bytes=vmem_limit,
        ),
    )(x, w1, b1, w2, b2)

    return out[:B, :V]


def init_params(key, embed_dim, vocab_size):
    """Deterministic init mimicking nn.Linear: uniform(-1/sqrt(fan_in), +)."""
    k1, k2, k3, k4 = jax.random.split(key, 4)
    # W_embedding: Linear(1, embed_dim), stored transposed as (1, E).
    bound1 = 1.0  # 1/sqrt(fan_in=1)
    w1 = jax.random.uniform(k1, (1, embed_dim), jnp.float32, -bound1, bound1)
    b1 = jax.random.uniform(k2, (1, embed_dim), jnp.float32, -bound1, bound1)
    # W_score: Linear(embed_dim, vocab_size), stored transposed as (E, V).
    bound2 = 1.0 / (embed_dim ** 0.5)
    w2 = jax.random.uniform(k3, (embed_dim, vocab_size), jnp.float32,
                            -bound2, bound2)
    b2 = jax.random.uniform(k4, (1, vocab_size), jnp.float32, -bound2, bound2)
    return w1, b1, w2, b2


if __name__ == "__main__":
    key = jax.random.PRNGKey(0)
    kx, kp = jax.random.split(key)

    # Small, TPU-friendly shapes: E a multiple of 128 (full-lane contraction),
    # V ragged (exercises the padding path), batch spanning two row tiles.
    batch = 256
    embed_dim = 128
    vocab_size = 1000

    # x: a batch of scalar "word codes", shape (B, 1) as nn.Linear(1, E) expects.
    x = jax.random.normal(kx, (batch, 1), jnp.float32)
    w1, b1, w2, b2 = init_params(kp, embed_dim, vocab_size)

    out = word2vec_forward(x, w1, b1, w2, b2, tb=128, tv=512)
    out = jax.block_until_ready(out)
    assert out.shape == (batch, vocab_size)
    assert out.dtype == jnp.float32

    # Pure-JAX reference.  Tolerance is generous enough to absorb MXU matmul
    # precision / accumulation-order differences between the kernel and XLA,
    # while still catching any real indexing/tiling bug (which would be O(1)).
    ref = (x @ w1 + b1) @ w2 + b2
    assert jnp.allclose(out, ref, atol=5e-2, rtol=5e-2), (
        f"max abs diff = {float(jnp.max(jnp.abs(out - ref)))}")

    print("KERNEL_OK")
</pallas_src>

<mosaic_0001>
module attributes {stable_mosaic.version = 11 : i64} {
  func.func @_word2vec_kernel(%arg0: i32, %arg1: i32, %arg2: memref<128x1xf32, #tpu.memory_space<vmem>>, %arg3: memref<1x128xf32, #tpu.memory_space<vmem>>, %arg4: memref<1x128xf32, #tpu.memory_space<vmem>>, %arg5: memref<128x512xf32, #tpu.memory_space<vmem>>, %arg6: memref<1x512xf32, #tpu.memory_space<vmem>>, %arg7: memref<128x512xf32, #tpu.memory_space<vmem>>) attributes {dimension_semantics = [#tpu.dimension_semantics<parallel>, #tpu.dimension_semantics<parallel>], iteration_bounds = array<i64: 2, 2>, scalar_prefetch = 0 : i64, scratch_operands = 0 : i64, tpu.core_type = #tpu.core_type<tc>, window_params = [{transform_indices = @transform_0, window_bounds = array<i64: 128, 1>}, {pipeline_mode = #tpu.pipeline_mode<synchronous>, transform_indices = @transform_1, window_bounds = array<i64: 1, 128>}, {pipeline_mode = #tpu.pipeline_mode<synchronous>, transform_indices = @transform_2, window_bounds = array<i64: 1, 128>}, {transform_indices = @transform_3, window_bounds = array<i64: 128, 512>}, {transform_indices = @transform_4, window_bounds = array<i64: 1, 512>}, {transform_indices = @transform_5, window_bounds = array<i64: 128, 512>}]} {
    %c0 = arith.constant 0 : index
    %c0_0 = arith.constant 0 : index
    %0 = vector.load %arg2[%c0, %c0_0] : memref<128x1xf32, #tpu.memory_space<vmem>>, vector<128x1xf32>
    %c0_1 = arith.constant 0 : index
    %c0_2 = arith.constant 0 : index
    %1 = vector.load %arg3[%c0_1, %c0_2] : memref<1x128xf32, #tpu.memory_space<vmem>>, vector<1x128xf32>
    %2 = vector.broadcast %0 : vector<128x1xf32> to vector<128x128xf32>
    %3 = vector.broadcast %1 : vector<1x128xf32> to vector<128x128xf32>
    %4 = arith.mulf %2, %3 : vector<128x128xf32>
    %c0_3 = arith.constant 0 : index
    %c0_4 = arith.constant 0 : index
    %5 = vector.load %arg4[%c0_3, %c0_4] : memref<1x128xf32, #tpu.memory_space<vmem>>, vector<1x128xf32>
    %6 = vector.broadcast %5 : vector<1x128xf32> to vector<128x128xf32>
    %7 = arith.addf %4, %6 : vector<128x128xf32>
    %c0_5 = arith.constant 0 : index
    %c0_6 = arith.constant 0 : index
    %8 = vector.load %arg5[%c0_5, %c0_6] : memref<128x512xf32, #tpu.memory_space<vmem>>, vector<128x512xf32>
    %cst = arith.constant dense<0.000000e+00> : vector<128x512xf32>
    %9 = tpu.matmul %7, %8, %cst {dimension_numbers = #tpu.dot_dimension_numbers<[1], [0], [0], [1], [0, 0, 1, 1], [], []>} : vector<128x128xf32>, vector<128x512xf32>, vector<128x512xf32> -> vector<128x512xf32>
    %c0_7 = arith.constant 0 : index
    %c0_8 = arith.constant 0 : index
    %10 = vector.load %arg6[%c0_7, %c0_8] : memref<1x512xf32, #tpu.memory_space<vmem>>, vector<1x512xf32>
    %11 = vector.broadcast %10 : vector<1x512xf32> to vector<128x512xf32>
    %12 = arith.addf %9, %11 : vector<128x512xf32>
    %c0_9 = arith.constant 0 : index
    %c0_10 = arith.constant 0 : index
    %13 = vector.load %arg7[%c0_9, %c0_10] : memref<128x512xf32, #tpu.memory_space<vmem>>, vector<128x512xf32>
    tpu.vector_store %arg7[%c0_9, %c0_10], %12 {strides = array<i32>} : memref<128x512xf32, #tpu.memory_space<vmem>>, vector<128x512xf32>,
    return
  }
  func.func @transform_0(%arg0: i32, %arg1: i32) -> (i32, i32) {
    %c0_i32 = arith.constant 0 : i32
    %c0_i32_0 = arith.constant 0 : i32
    return %arg0, %c0_i32 : i32, i32
  }
  func.func @transform_1(%arg0: i32, %arg1: i32) -> (i32, i32) {
    %c0_i32 = arith.constant 0 : i32
    %c0_i32_0 = arith.constant 0 : i32
    %c0_i32_1 = arith.constant 0 : i32
    return %c0_i32, %c0_i32_0 : i32, i32
  }
  func.func @transform_2(%arg0: i32, %arg1: i32) -> (i32, i32) {
    %c0_i32 = arith.constant 0 : i32
    %c0_i32_0 = arith.constant 0 : i32
    %c0_i32_1 = arith.constant 0 : i32
    return %c0_i32, %c0_i32_0 : i32, i32
  }
  func.func @transform_3(%arg0: i32, %arg1: i32) -> (i32, i32) {
    %c0_i32 = arith.constant 0 : i32
    %c0_i32_0 = arith.constant 0 : i32
    return %c0_i32, %arg1 : i32, i32
  }
  func.func @transform_4(%arg0: i32, %arg1: i32) -> (i32, i32) {
    %c0_i32 = arith.constant 0 : i32
    %c0_i32_0 = arith.constant 0 : i32
    return %c0_i32, %arg1 : i32, i32
  }
  func.func @transform_5(%arg0: i32, %arg1: i32) -> (i32, i32) {
    %c0_i32 = arith.constant 0 : i32
    return %arg0, %arg1 : i32, i32
  }
}

</mosaic_0001>

<bundles_post_ra>
// kernel: tpu_custom_call.1
= control target key start
LH: loop header
LB: loop body
LE: loop exit
PB: predicated region body
PF: predicated region fallthrough
CT: control target
= control target key end

     0   :  { %10 = vsyncpa [#allocation3], 0  ;;  %s1870_s0 = inlined_call_operand.vmem [shape: f32[256,1], index: 0, kind: input, shape index: {}]   ;;  %s1871_s1 = inlined_call_operand.vmem [shape: f32[1,128], index: 1, kind: input, shape index: {}]   ;;  %s1872_s2 = inlined_call_operand.vmem [shape: f32[1,128], index: 2, kind: input, shape index: {}]   ;;  %s1873_s3 = inlined_call_operand.hbm [shape: f32[128,1024], index: 3, kind: input, shape index: {}]   ;;  %s1874_s4 = inlined_call_operand.vmem [shape: f32[1,1024], index: 4, kind: input, shape index: {}]   ;;  %s1875_s5 = inlined_call_operand.hbm [shape: f32[256,1024], index: 5, kind: output, shape index: {}]  }
   0x1   :  { %12 = vsyncpa [#allocation3 + $0x1], 0 }
   0x2   :  { %13 = vsyncpa [#allocation4], 0 }
   0x3   :  { %15 = vsyncpa [#allocation4 + $0x1], 0  ;;  %s1366_s18 = smov 0   ;;  %s1368_s19 = smov 0  }
   0x4   :  { %s1370_s20 = smov 0   ;;  %s1372_s21 = smov 0  }
   0x5   :  { %s1374_s22 = smov 0   ;;  %s1376_s23 = smov 0  }
   0x6   :  { %s1378_s24 = smov 0   ;;  %s1380_s25 = smov 0  }
   0x7   :  { %s1382_s26 = smov 0   ;;  %s1384_s27 = smov 0  }
   0x8   :  { %s1386_s28 = smov 0  }
   0x9 LB: > { %1881 = sst [smem:[#allocation8_spill]] %s1304_s23  ;;  %s1040_s29 = sadd.s32 4294967295, %s1324_s28   ;;  %s1324_s28 = sphi %s1386_s28, %s21_s28   ;;  %s1320_s27 = sphi %s1384_s27, %s1897_s27   ;;  %s1316_s26 = sphi %s1382_s26, %s1896_s26   ;;  %s1312_s25 = sphi %s1380_s25, %s1895_s25   ;;  %s1308_s24 = sphi %s1378_s24, %s1894_s24   ;;  %s1304_s23 = sphi %s1376_s23, %s1893_s23   ;;  %s1300_s22 = sphi %s1374_s22, %s1902_s22   ;;  %s1296_s21 = sphi %s1372_s21, %s1901_s21   ;;  %s1292_s20 = sphi %s1370_s20, %s1900_s20   ;;  %s1288_s19 = sphi %s1368_s19, %s1899_s19   ;;  %s1284_s18 = sphi %s1366_s18, %s1898_s18  }
   0xa   : > { %1882 = sst [smem:[#allocation9_spill]] %s1316_s26  ;;  %s1041_s30 = sadd.s32 4294967294, %s1324_s28  }
   0xb   : > { %1883 = sst [smem:[#allocation10_spill]] %s1320_s27  ;;  %s30_s6 = sadd.s32 1, %s1316_s26 }
   0xc   : > { %s33_s7 = sadd.s32 1, %s1320_s27  ;;  %p31_p0 = scmp.ge.s32.totalorder %s30_s6, 2 }
   0xd   : > { %s108_s8 = sadd.s32 1, %s1304_s23  ;;  %p115_p1 = scmp.ne.s32.totalorder %s1304_s23, %s1300_s22 }
   0xe   : > { %p116_p2 = scmp.eq.s32.totalorder %s1324_s28, 0  ;;  %s1904_s6 = smov (%p31_p0, %s30_s6), 0 }
   0xf   : > { %1884 = sst [smem:[#allocation11_spill]] %s1904_s6  ;;  %s1906_s7 = smov (!%p31_p0, %s33_s7), %s1320_s27 }
  0x10   : > { %s105_s9 = ssub.s32 %s1316_s26, %s1904_s6  ;;  %p1432_p3 = por %p116_p2, %p115_p1 }
  0x11   : > { %p35_p4 = scmp.ge.s32.totalorder %s1906_s7, 2  ;;  %p106_p5 = scmp.eq.s32.totalorder %s105_s9, 0 }
  0x12   : > { %p121_p6 = scmp.ne.s32.totalorder %s1300_s22, %s1296_s21  ;;  %p122_p7 = scmp.eq.s32.totalorder %s1040_s29, 0 }
  0x13   : > { %s1908_s7 = smov (%p35_p4, %s1906_s7), 0  ;;  %s162_s15 = sadd.s32 1, %s1292_s20 }
  0x14   : > { %1886 = sst [smem:[#allocation12_spill]] %s1908_s7  ;;  %p1442_p8 = por %p122_p7, %p121_p6 }
  0x15   : > { %s1440_s11 = scalar_select %p106_p5, %s1304_s23, %s108_s8  }
  0x16   : > { %s157_s13 = ssub.s32 %s1320_s27, %s1908_s7  ;;  %p172_p10 = scmp.ne.s32.totalorder %s1292_s20, %s1288_s19 }
  0x17   : > { %1887 = sst [smem:[#allocation13_spill]] %s1440_s11  ;;  %s159_s14 = sor.u32 %s157_s13, %s105_s9 }
  0x18   : > { %p160_p9 = scmp.eq.s32.totalorder %s159_s14, 0  ;;  %p173_p11 = scmp.eq.s32.totalorder %s1040_s29, 3 }
  0x19   : > { %p178_p12 = scmp.ne.s32.totalorder %s1288_s19, %s1284_s18  ;;  %p179_p0 = scmp.eq.s32.totalorder %s1041_s30, 3 }
  0x1a   : > { %s1454_s16 = scalar_select %p160_p9, %s1292_s20, %s162_s15  }
  0x1b   : > { %p1456_p13 = por %p173_p11, %p172_p10  ;;  %p1076_p1 = scmp.lt.s32.totalorder %s1324_s28, 4 }
  0x1c   : > { %p1461_p2 = por %p179_p0, %p178_p12  ;;  %s214_s8 = sand.u32 1, %s1304_s23  }
  0x1d   : > { %s1044_s9 = sshll.u32 %s214_s8, 9  ;;  %s1062_s13 = sshll.u32 %s1316_s26, 9 }
  0x1e   : > { %s224_s29 = scalar_lea.hbm %s1873_s3, %s1062_s13  ;;  %s218_s6 = scalar_lea.vmem [#allocation2], %s1044_s9 }
  0x1f   : > { %s225_s15 = sshll.u32 %s218_s6, 4  ;;  %p1472_p4 = pnand %p1076_p1, %p1432_p3  ;;  %s226_s15 = int_to_ptr.vmem [resolvable:$true] %s225_s15 }
  0x20   : > { %s215_s30 = scalar_lea.sflag [#allocation3], %s214_s8  ;;  %s1189_s11 = scalar_lea.vmem %s226_s15, 8192 }
  0x21   : > { %p1178_p5 = pneg %p1472_p4  ;;  %p1190_p6 = scmp.ne.s32.totalorder %s226_s15, %s1189_s11 }
  0x22   : > { %s1326_s26 = smov [#allocation2]  }
  0x23   : > { %p1192_p7 = pnand %p1190_p6, %p1178_p5  ;;  %s1194_s23 = sshll.u32 %s1326_s26, 4  ;;  %s1195_s23 = int_to_ptr.vmem [resolvable:$false] %s1194_s23 }
  0x24   : > { %s1196_s7 = scalar_lea.vmem %s1195_s23, 16384  ;;  %p1197_p10 = scmp.lt.s32.totalorder %s226_s15, %s1195_s23 }
  0x25   : > { %p1193_p9 = pneg %p1192_p7  ;;  %p1198_p11 = scmp.lt.s32.totalorder %s1196_s7, %s1189_s11 }
  0x27   : > { %p1199_p12 = por %p1198_p11, %p1197_p10 }
  0x29   : > { %p1200_p0 = pnand %p1199_p12, %p1193_p9 }
  0x2b   : > { %1203 = shalt.err (!%p1200_p0)
}
  0x2c   : > { %s1327_s6 = smov 1024   ;;  %s1328_s10 = smov 512  }
  0x2d   : > { %s1329_s8 = smov 32   ;;  %p1047_p3 = scmp.ge.s32.totalorder %s1324_s28, 1 }
  0x2e   : > { %1071 = dma.hbm_to_vmem [thread:$0]  (!%p1472_p4), %s224_s29, 8192, %s226_s15, %s215_s30, %s1327_s6, %s1328_s10, %s1329_s8  }
  0x2f   : > { %p241_p1 = scmp.lt.s32.totalorder %s1324_s28, 5 }
  0x31   : > { %p242_p5 = pnand %p1047_p3, %p241_p1 }
  0x32   : > { %s247_s26 = sand.u32 (!%p242_p5), 1, %s1300_s22  }
  0x33   : > { %245 = sbr.rel (%p242_p5) target bundleno = 464 (0x1d0), region = 40  ;;  %s1048_s23 = sshll.u32 (!%p242_p5), %s247_s26, 9 }
  0x34   : > { %s248_s11 = scalar_lea.sflag (!%p242_p5), [#allocation3], %s247_s26  ;;  %s1483_s9 = scalar_lea.vmem (!%p242_p5), [#allocation2], %s1048_s23 }
  0x38   : > { %1275 = dma.done.wait (%p1442_p8), %s248_s11, 8192  }
  0x39   : > { %1277 = vsyncadd (%p1442_p8), %s248_s11, 4294959104  ;;  %s1050_s13 = sshll.u32 %s1312_s25, 4  ;;  %v1330_v0 = vmov 0   ;;  %v1331_v3 = vmov 0.0   ;;  %v504_v8 = vld [vmem:[%s1483_s9 + $0x1e8] sm:$0xff]  ;;  %v506_v9 = vld [vmem:[%s1483_s9 + $0x1f8] sm:$0xff] }
  0x3a   : > { %1175 = vset.pattern.permute.xlu1 %v1330_v0  ;;  %1174 = vset.pattern.permute.xlu0 %v1330_v0  ;;  %p288_p4 = scmp.lt.s32.totalorder %s1050_s13, 31  ;;  %v503_v10 = vld [vmem:[%s1483_s9 + $0x1e0] sm:$0xff]  ;;  %v505_v11 = vld [vmem:[%s1483_s9 + $0x1f0] sm:$0xff]  ;;  %v500_v12 = vld [vmem:[%s1483_s9 + $0x1c8] sm:$0xff]  ;;  %s1650_s10 = sshll.u32 %s1308_s24, 2 }
  0x3b   : > { %593 = vmatprep.mubr.f32.mxu0 %v1331_v3  ;;  %754 = vmatprep.mubr.f32.mxu1 %v1331_v3  ;;  %v502_v13 = vld [vmem:[%s1483_s9 + $0x1d8] sm:$0xff]  ;;  %v499_v14 = vld [vmem:[%s1483_s9 + $0x1c0] sm:$0xff]  ;;  %v501_v15 = vld [vmem:[%s1483_s9 + $0x1d0] sm:$0xff]  ;;  %p295_p8 = scmp.lt.s32.totalorder %s1650_s10, 7 }
  0x3c   : > { %s1910_s13 = smov (!%p288_p4, %s1050_s13), 31  ;;  %529 = vmatprep.subr.mxu0 %v504_v8  ;;  %690 = vmatprep.subr.mxu1 %v506_v9  ;;  %v496_v16 = vld [vmem:[%s1483_s9 + $0x1a8] sm:$0xff]  ;;  %v498_v17 = vld [vmem:[%s1483_s9 + $0x1b8] sm:$0xff]  ;;  %v495_v18 = vld [vmem:[%s1483_s9 + $0x1a0] sm:$0xff] }
  0x3d   : > { %s1051_s27 = sshll.u32 %s1910_s13, 3  ;;  %530 = vmatpush1.msra.mxu0 %v503_v10  ;;  %691 = vmatpush1.msra.mxu1 %v505_v11  ;;  %v497_v19 = vld [vmem:[%s1483_s9 + $0x1b0] sm:$0xff]  ;;  %v492_v22 = vld [vmem:[%s1483_s9 + $0x188] sm:$0xff]  ;;  %v494_v23 = vld [vmem:[%s1483_s9 + $0x198] sm:$0xff] }
  0x3e   : > { %s1493_s15 = scalar_lea.vmem %s1870_s0, %s1051_s27  ;;  %531 = vmatprep.subr.mxu0 %v500_v12  ;;  %692 = vmatprep.subr.mxu1 %v502_v13  ;;  %v491_v24 = vld [vmem:[%s1483_s9 + $0x180] sm:$0xff]  ;;  %v493_v25 = vld [vmem:[%s1483_s9 + $0x190] sm:$0xff]  ;;  %v488_v26 = vld [vmem:[%s1483_s9 + $0x168] sm:$0xff]  ;;  %s1063_s27 = sshll.u32 %s1312_s25, 7 }
  0x3f   : > { %v303_v1 = vld [vmem:[%s1493_s15 + $0x10] sm:$0xff]  ;;  %v301_v2 = vld [vmem:[%s1493_s15] sm:$0xff]  ;;  %v304_v4 = vld [vmem:[%s1493_s15 + $0x18] sm:$0xff]  ;;  %532 = vmatpush1.msra.mxu0 %v499_v14  ;;  %693 = vmatpush1.msra.mxu1 %v501_v15  ;;  %s296_s8 = scalar_select %p295_p8, %s1650_s10, 7 }
  0x40   : > { %330 = vperm.xlu1 %1175, %v303_v1   ;;  %320 = vperm.xlu0 %1174, %v301_v2   ;;  %v302_v5 = vld [vmem:[%s1493_s15 + $0x8] sm:$0xff]  ;;  %v305_v7 = vld [vmem:[%s1493_s15 + $0x20] sm:$0xff]  ;;  %v308_v20 = vld [vmem:[%s1493_s15 + $0x38] sm:$0xff]  ;;  %s929_s14 = sadd.s32 %s1063_s27, %s1650_s10  ;;  %s1332_s10 = smov [#allocation5]  }
  0x41   : > { %v306_v6 = vld [vmem:[%s1493_s15 + $0x28] sm:$0xff]  ;;  %v307_v21 = vld [vmem:[%s1493_s15 + $0x30] sm:$0xff]  ;;  %533 = vmatprep.subr.mxu0 %v496_v16  ;;  %694 = vmatprep.subr.mxu1 %v498_v17  ;;  %v490_v27 = vld [vmem:[%s1483_s9 + $0x178] sm:$0xff]  ;;  %s297_s11 = scalar_lea.vmem %s1874_s4, %s296_s8  ;;  %s1059_s25 = sshll.u32 %s929_s14, 7 }
  0x42   : > { %534 = vmatpush1.msra.mxu0 %v495_v18  ;;  %695 = vmatpush1.msra.mxu1 %v497_v19  ;;  %v310_v28 = vld [vmem:[%s1493_s15 + $0x48] sm:$0xff]  ;;  %v309_v29 = vld [vmem:[%s1493_s15 + $0x40] sm:$0xff]  ;;  %v489_v31 = vld [vmem:[%s1483_s9 + $0x170] sm:$0xff]  ;;  %s1798_s30 = scalar_lea.hbm %s1875_s5, %s1059_s25  ;;  %s1208_s8 = sshll.u32 %s1332_s10, 4  ;;  %s1209_s8 = int_to_ptr.vmem [resolvable:$false] %s1208_s8 }
  0x43   : > { %535 = vmatprep.subr.mxu0 %v492_v22  ;;  %696 = vmatprep.subr.mxu1 %v494_v23  ;;  %v487_v30 = vld [vmem:[%s1483_s9 + $0x160] sm:$0xff]  ;;  %v484_v32 = vld [vmem:[%s1483_s9 + $0x148] sm:$0xff]  ;;  %v486_v33 = vld [vmem:[%s1483_s9 + $0x158] sm:$0xff]  ;;  %s1210_s26 = scalar_lea.vmem %s1209_s8, 16384 }
  0x44   : > { %335 = vperm.xlu1 %1175, %v304_v4   ;;  %325 = vperm.xlu0 %1174, %v302_v5   ;;  %v483_v34 = vld [vmem:[%s1483_s9 + $0x140] sm:$0xff]  ;;  %v485_v35 = vld [vmem:[%s1483_s9 + $0x150] sm:$0xff]  ;;  %v312_v36 = vld [vmem:[%s1493_s15 + $0x58] sm:$0xff] }
  0x45   : > { %536 = vmatpush1.msra.mxu0 %v491_v24  ;;  %697 = vmatpush1.msra.mxu1 %v493_v25  ;;  %v311_v37 = vld [vmem:[%s1493_s15 + $0x50] sm:$0xff]  ;;  %v480_v38 = vld [vmem:[%s1483_s9 + $0x128] sm:$0xff]  ;;  %v482_v39 = vld [vmem:[%s1483_s9 + $0x138] sm:$0xff] }
  0x46   : > { %537 = vmatprep.subr.mxu0 %v488_v26  ;;  %698 = vmatprep.subr.mxu1 %v490_v27  ;;  %v479_v40 = vld [vmem:[%s1483_s9 + $0x120] sm:$0xff]  ;;  %v481_v41 = vld [vmem:[%s1483_s9 + $0x130] sm:$0xff]  ;;  %v476_v42 = vld [vmem:[%s1483_s9 + $0x108] sm:$0xff] }
  0x47   : > { %538 = vmatpush1.msra.mxu0 %v487_v30  ;;  %699 = vmatpush1.msra.mxu1 %v489_v31  ;;  %v478_v43 = vld [vmem:[%s1483_s9 + $0x118] sm:$0xff]  ;;  %v314_v44 = vld [vmem:[%s1493_s15 + $0x68] sm:$0xff]  ;;  %v313_v45 = vld [vmem:[%s1493_s15 + $0x60] sm:$0xff] }
  0x48   : > { %345 = vperm.xlu1 %1175, %v306_v6   ;;  %340 = vperm.xlu0 %1174, %v305_v7   ;;  %v475_v46 = vld [vmem:[%s1483_s9 + $0x100] sm:$0xff]  ;;  %v477_v47 = vld [vmem:[%s1483_s9 + $0x110] sm:$0xff]  ;;  %v472_v48 = vld [vmem:[%s1483_s9 + $0xe8] sm:$0xff] }
  0x49   : > { %539 = vmatprep.subr.mxu0 %v484_v32  ;;  %700 = vmatprep.subr.mxu1 %v486_v33  ;;  %v474_v49 = vld [vmem:[%s1483_s9 + $0xf8] sm:$0xff]  ;;  %v471_v50 = vld [vmem:[%s1483_s9 + $0xe0] sm:$0xff]  ;;  %v473_v51 = vld [vmem:[%s1483_s9 + $0xf0] sm:$0xff] }
  0x4a   : > { %540 = vmatpush1.msra.mxu0 %v483_v34  ;;  %701 = vmatpush1.msra.mxu1 %v485_v35  ;;  %v316_v52 = vld [vmem:[%s1493_s15 + $0x78] sm:$0xff]  ;;  %v315_v53 = vld [vmem:[%s1493_s15 + $0x70] sm:$0xff]  ;;  %v468_v54 = vld [vmem:[%s1483_s9 + $0xc8] sm:$0xff] }
  0x4b   : > { %541 = vmatprep.subr.mxu0 %v480_v38  ;;  %702 = vmatprep.subr.mxu1 %v482_v39  ;;  %v470_v55 = vld [vmem:[%s1483_s9 + $0xd8] sm:$0xff]  ;;  %v467_v56 = vld [vmem:[%s1483_s9 + $0xc0] sm:$0xff]  ;;  %v469_v57 = vld [vmem:[%s1483_s9 + $0xd0] sm:$0xff] }
  0x4c   : > { %355 = vperm.xlu1 %1175, %v308_v20   ;;  %350 = vperm.xlu0 %1174, %v307_v21   ;;  %v464_v58 = vld [vmem:[%s1483_s9 + $0xa8] sm:$0xff]  ;;  %v466_v59 = vld [vmem:[%s1483_s9 + $0xb8] sm:$0xff]  ;;  %v463_v60 = vld [vmem:[%s1483_s9 + $0xa0] sm:$0xff] }
  0x4d   : > { %542 = vmatpush1.msra.mxu0 %v479_v40  ;;  %703 = vmatpush1.msra.mxu1 %v481_v41  ;;  %v465_v61 = vld [vmem:[%s1483_s9 + $0xb0] sm:$0xff]  ;;  %v460_v62 = vld [vmem:[%s1483_s9 + $0x88] sm:$0xff]  ;;  %v462_v63 = vld [vmem:[%s1483_s9 + $0x98] sm:$0xff] }
  0x4e   : > { %543 = vmatprep.subr.mxu0 %v476_v42  ;;  %704 = vmatprep.subr.mxu1 %v478_v43  ;;  %v459_v0 = vld [vmem:[%s1483_s9 + $0x80] sm:$0xff]  ;;  %v461_v1 = vld [vmem:[%s1483_s9 + $0x90] sm:$0xff]  ;;  %v456_v2 = vld [vmem:[%s1483_s9 + $0x68] sm:$0xff] }
  0x4f   : > { %544 = vmatpush1.msra.mxu0 %v475_v46  ;;  %705 = vmatpush1.msra.mxu1 %v477_v47  ;;  %v458_v4 = vld [vmem:[%s1483_s9 + $0x78] sm:$0xff]  ;;  %v455_v5 = vld [vmem:[%s1483_s9 + $0x60] sm:$0xff]  ;;  %v457_v6 = vld [vmem:[%s1483_s9 + $0x70] sm:$0xff] }
  0x50   : > { %365 = vperm.xlu1 %1175, %v310_v28   ;;  %360 = vperm.xlu0 %1174, %v309_v29   ;;  %v452_v7 = vld [vmem:[%s1483_s9 + $0x48] sm:$0xff]  ;;  %v454_v8 = vld [vmem:[%s1483_s9 + $0x58] sm:$0xff]  ;;  %v451_v9 = vld [vmem:[%s1483_s9 + $0x40] sm:$0xff] }
  0x51   : > { %545 = vmatprep.subr.mxu0 %v472_v48  ;;  %706 = vmatprep.subr.mxu1 %v474_v49  ;;  %v453_v10 = vld [vmem:[%s1483_s9 + $0x50] sm:$0xff]  ;;  %v448_v11 = vld [vmem:[%s1483_s9 + $0x28] sm:$0xff]  ;;  %v450_v12 = vld [vmem:[%s1483_s9 + $0x38] sm:$0xff] }
  0x52   : > { %546 = vmatpush1.msra.mxu0 %v471_v50  ;;  %707 = vmatpush1.msra.mxu1 %v473_v51  ;;  %v447_v13 = vld [vmem:[%s1483_s9 + $0x20] sm:$0xff]  ;;  %v449_v14 = vld [vmem:[%s1483_s9 + $0x30] sm:$0xff]  ;;  %v444_v15 = vld [vmem:[%s1483_s9 + $0x8] sm:$0xff] }
  0x53   : > { %547 = vmatprep.subr.mxu0 %v468_v54  ;;  %708 = vmatprep.subr.mxu1 %v470_v55  ;;  %v446_v16 = vld [vmem:[%s1483_s9 + $0x18] sm:$0xff]  ;;  %v443_v17 = vld [vmem:[%s1483_s9] sm:$0xff]  ;;  %v445_v18 = vld [vmem:[%s1483_s9 + $0x10] sm:$0xff]  ;;  %s284_s9 = sand.u32 1, %s1288_s19  }
  0x54   : > { %375 = vperm.xlu1 %1175, %v312_v36   ;;  %370 = vperm.xlu0 %1174, %v311_v37   ;;  %v1580_v19 = vld [vmem:[%s1871_s1] ss:$0 sm:$0xff]  ;;  %s1049_s13 = sshll.u32 %s284_s9, 9  ;;  %s1810_s7 = scalar_lea.sflag [#allocation4], %s284_s9 }
  0x55   : > { %548 = vmatpush1.msra.mxu0 %v467_v56  ;;  %709 = vmatpush1.msra.mxu1 %v469_v57  ;;  %v1585_v20 = vld [vmem:[%s1872_s2] ss:$0 sm:$0xff]  ;;  %s1670_s24 = scalar_lea.vmem [#allocation5], %s1049_s13 }
  0x56   : > { %549 = vmatprep.subr.mxu0 %v464_v58  ;;  %710 = vmatprep.subr.mxu1 %v466_v59  ;;  %s932_s29 = sshll.u32 %s1670_s24, 4  ;;  %s1800_s29 = int_to_ptr.vmem [resolvable:$true] %s932_s29 }
  0x57   : > { %550 = vmatpush1.msra.mxu0 %v463_v60  ;;  %711 = vmatpush1.msra.mxu1 %v465_v61  ;;  %s1204_s6 = scalar_lea.vmem %s1800_s29, 8192  ;;  %p1211_p10 = scmp.lt.s32.totalorder %s1800_s29, %s1209_s8 }
  0x58   : > { %385 = vperm.xlu1 %1175, %v314_v44   ;;  %380 = vperm.xlu0 %1174, %v313_v45   ;;  %p1205_p6 = scmp.ne.s32.totalorder %s1800_s29, %s1204_s6  ;;  %p1212_p11 = scmp.lt.s32.totalorder %s1210_s26, %s1204_s6 }
  0x59   : > { %551 = vmatprep.subr.mxu0 %v460_v62  ;;  %712 = vmatprep.subr.mxu1 %v462_v63 }
  0x5a   : > { %552 = vmatpush1.msra.mxu0 %v459_v0  ;;  %713 = vmatpush1.msra.mxu1 %v461_v1  ;;  %p1206_p7 = pnand %p1205_p6, %p1456_p13  ;;  %p1213_p12 = por %p1212_p11, %p1211_p10 }
  0x5b   : > { %553 = vmatprep.subr.mxu0 %v456_v2  ;;  %714 = vmatprep.subr.mxu1 %v458_v4 }
  0x5c   : > { %395 = vperm.xlu1 %1175, %v316_v52   ;;  %390 = vperm.xlu0 %1174, %v315_v53   ;;  %p1207_p9 = pneg %p1206_p7 }
  0x5d   : > { %554 = vmatpush1.msra.mxu0 %v455_v5  ;;  %715 = vmatpush1.msra.mxu1 %v457_v6  ;;  %v509_v6 = vlaneseq }
  0x5e   : > { %555 = vmatprep.subr.mxu0 %v452_v7  ;;  %716 = vmatprep.subr.mxu1 %v454_v8  ;;  %p1214_p0 = pnand %p1213_p12, %p1207_p9 }
  0x5f   : > { %556 = vmatpush1.msra.mxu0 %v451_v9  ;;  %717 = vmatpush1.msra.mxu1 %v453_v10  ;;  %v510_v7 = vshrl.u32 %v509_v6, 7 }
  0x60   : > { %557 = vmatprep.subr.mxu0 %v448_v11  ;;  %718 = vmatprep.subr.mxu1 %v450_v12 }
  0x61   : > { %558 = vmatpush1.msra.mxu0 %v447_v13  ;;  %719 = vmatpush1.msra.mxu1 %v449_v14  ;;  %v511_v8 = vsub.s32 0, %v510_v7  ;;  %v519_v9 = vsub.s32 2, %v510_v7  ;;  %v515_v10 = vsub.s32 1, %v510_v7  ;;  %v523_v11 = vsub.s32 3, %v510_v7 }
  0x62   : > { %559 = vmatprep.subr.mxu0 %v444_v15  ;;  %720 = vmatprep.subr.mxu1 %v446_v16 }
  0x63   : > { %560 = vmatpush1.msra.mxu0 %v443_v17  ;;  %721 = vmatpush1.msra.mxu1 %v445_v18 }
  0xbb   : > { %v321_v21 = vpop.permute.xlu0 %320  ;;  %v331_v24 = vpop.permute.xlu1 %330 }
  0xbc   : > { %v404_v22 = vmul.f32 %v1580_v19, %v321_v21  ;;  %v406_v26 = vmul.f32 %v1580_v19, %v331_v24 }
  0xbe   : > { %v427_v23 = vadd.f32 %v1585_v20, %v404_v22  ;;  %v429_v29 = vadd.f32 %v1585_v20, %v406_v26 }
  0xbf   : > { %v326_v25 = vpop.permute.xlu0 %325  ;;  %v336_v30 = vpop.permute.xlu1 %335 }
  0xc0   : > { %v405_v27 = vmul.f32 %v1580_v19, %v326_v25  ;;  %594 = vmatmul.mubr.f32.vlgmr.msra.gmra.mxu0 %v427_v23  ;;  %755 = vmatmul.mubr.f32.vlgmr.msra.gmra.mxu1 %v427_v23  ;;  %v407_v31 = vmul.f32 %v1580_v19, %v336_v30 }
  0xc1   : > { %599 = vmatprep.mubr.f32.mxu0 %v1331_v3  ;;  %760 = vmatprep.mubr.f32.mxu1 %v1331_v3 }
  0xc2   : > { %v428_v28 = vadd.f32 %v1585_v20, %v405_v27  ;;  %v430_v33 = vadd.f32 %v1585_v20, %v407_v31 }
  0xc3   : > { %v341_v32 = vpop.permute.xlu0 %340  ;;  %v346_v35 = vpop.permute.xlu1 %345 }
  0xc4   : > { %600 = vmatmul.mubr.f32.gmra.mxu0 %v428_v28  ;;  %761 = vmatmul.mubr.f32.gmra.mxu1 %v428_v28  ;;  %v408_v34 = vmul.f32 %v1580_v19, %v341_v32  ;;  %v409_v36 = vmul.f32 %v1580_v19, %v346_v35 }
  0xc5   : > { %605 = vmatprep.mubr.f32.mxu0 %v1331_v3  ;;  %766 = vmatprep.mubr.f32.mxu1 %v1331_v3 }
  0xc6   : > { %v431_v37 = vadd.f32 %v1585_v20, %v408_v34  ;;  %v432_v39 = vadd.f32 %v1585_v20, %v409_v36 }
  0xc7   : > { %v351_v38 = vpop.permute.xlu0 %350  ;;  %v356_v41 = vpop.permute.xlu1 %355 }
  0xc8   : > { %606 = vmatmul.mubr.f32.gmra.mxu0 %v429_v29  ;;  %767 = vmatmul.mubr.f32.gmra.mxu1 %v429_v29  ;;  %v410_v40 = vmul.f32 %v1580_v19, %v351_v38  ;;  %v411_v42 = vmul.f32 %v1580_v19, %v356_v41 }
  0xc9   : > { %611 = vmatprep.mubr.f32.mxu0 %v1331_v3  ;;  %772 = vmatprep.mubr.f32.mxu1 %v1331_v3 }
  0xca   : > { %v433_v43 = vadd.f32 %v1585_v20, %v410_v40  ;;  %v434_v45 = vadd.f32 %v1585_v20, %v411_v42 }
  0xcb   : > { %v361_v44 = vpop.permute.xlu0 %360  ;;  %v366_v47 = vpop.permute.xlu1 %365 }
  0xcc   : > { %612 = vmatmul.mubr.f32.gmra.mxu0 %v430_v33  ;;  %773 = vmatmul.mubr.f32.gmra.mxu1 %v430_v33  ;;  %v412_v46 = vmul.f32 %v1580_v19, %v361_v44  ;;  %v413_v48 = vmul.f32 %v1580_v19, %v366_v47 }
  0xcd   : > { %617 = vmatprep.mubr.f32.mxu0 %v1331_v3  ;;  %778 = vmatprep.mubr.f32.mxu1 %v1331_v3 }
  0xce   : > { %v435_v49 = vadd.f32 %v1585_v20, %v412_v46  ;;  %v436_v51 = vadd.f32 %v1585_v20, %v413_v48 }
  0xcf   : > { %v371_v50 = vpop.permute.xlu0 %370  ;;  %v376_v53 = vpop.permute.xlu1 %375 }
  0xd0   : > { %618 = vmatmul.mubr.f32.gmra.mxu0 %v431_v37  ;;  %779 = vmatmul.mubr.f32.gmra.mxu1 %v431_v37  ;;  %v414_v52 = vmul.f32 %v1580_v19, %v371_v50  ;;  %v415_v54 = vmul.f32 %v1580_v19, %v376_v53 }
  0xd1   : > { %623 = vmatprep.mubr.f32.mxu0 %v1331_v3  ;;  %784 = vmatprep.mubr.f32.mxu1 %v1331_v3 }
  0xd2   : > { %v437_v55 = vadd.f32 %v1585_v20, %v414_v52  ;;  %v438_v57 = vadd.f32 %v1585_v20, %v415_v54 }
  0xd3   : > { %v381_v56 = vpop.permute.xlu0 %380  ;;  %v386_v59 = vpop.permute.xlu1 %385 }
  0xd4   : > { %624 = vmatmul.mubr.f32.gmra.mxu0 %v432_v39  ;;  %785 = vmatmul.mubr.f32.gmra.mxu1 %v432_v39  ;;  %v416_v58 = vmul.f32 %v1580_v19, %v381_v56  ;;  %v417_v60 = vmul.f32 %v1580_v19, %v386_v59 }
  0xd5   : > { %629 = vmatprep.mubr.f32.mxu0 %v1331_v3  ;;  %790 = vmatprep.mubr.f32.mxu1 %v1331_v3 }
  0xd6   : > { %v439_v61 = vadd.f32 %v1585_v20, %v416_v58  ;;  %v440_v63 = vadd.f32 %v1585_v20, %v417_v60 }
  0xd7   : > { %v391_v62 = vpop.permute.xlu0 %390  ;;  %v396_v1 = vpop.permute.xlu1 %395 }
  0xd8   : > { %630 = vmatmul.mubr.f32.gmra.mxu0 %v433_v43  ;;  %791 = vmatmul.mubr.f32.gmra.mxu1 %v433_v43  ;;  %v418_v0 = vmul.f32 %v1580_v19, %v391_v62  ;;  %v419_v2 = vmul.f32 %v1580_v19, %v396_v1 }
  0xd9   : > { %635 = vmatprep.mubr.f32.mxu0 %v1331_v3  ;;  %796 = vmatprep.mubr.f32.mxu1 %v1331_v3 }
  0xda   : > { %v441_v4 = vadd.f32 %v1585_v20, %v418_v0  ;;  %v442_v5 = vadd.f32 %v1585_v20, %v419_v2 }
  0xdc   : > { %636 = vmatmul.mubr.f32.gmra.mxu0 %v434_v45  ;;  %797 = vmatmul.mubr.f32.gmra.mxu1 %v434_v45 }
  0xdd   : > { %641 = vmatprep.mubr.f32.mxu0 %v1331_v3  ;;  %802 = vmatprep.mubr.f32.mxu1 %v1331_v3 }
  0xe0   : > { %642 = vmatmul.mubr.f32.gmra.mxu0 %v435_v49  ;;  %803 = vmatmul.mubr.f32.gmra.mxu1 %v435_v49 }
  0xe1   : > { %647 = vmatprep.mubr.f32.mxu0 %v1331_v3  ;;  %808 = vmatprep.mubr.f32.mxu1 %v1331_v3 }
  0xe4   : > { %648 = vmatmul.mubr.f32.gmra.mxu0 %v436_v51  ;;  %809 = vmatmul.mubr.f32.gmra.mxu1 %v436_v51 }
  0xe5   : > { %653 = vmatprep.mubr.f32.mxu0 %v1331_v3  ;;  %814 = vmatprep.mubr.f32.mxu1 %v1331_v3 }
  0xe8   : > { %654 = vmatmul.mubr.f32.gmra.mxu0 %v437_v55  ;;  %815 = vmatmul.mubr.f32.gmra.mxu1 %v437_v55 }
  0xe9   : > { %659 = vmatprep.mubr.f32.mxu0 %v1331_v3  ;;  %820 = vmatprep.mubr.f32.mxu1 %v1331_v3 }
  0xec   : > { %660 = vmatmul.mubr.f32.gmra.mxu0 %v438_v57  ;;  %821 = vmatmul.mubr.f32.gmra.mxu1 %v438_v57 }
  0xed   : > { %665 = vmatprep.mubr.f32.mxu0 %v1331_v3  ;;  %826 = vmatprep.mubr.f32.mxu1 %v1331_v3 }
  0xf0   : > { %666 = vmatmul.mubr.f32.gmra.mxu0 %v439_v61  ;;  %827 = vmatmul.mubr.f32.gmra.mxu1 %v439_v61 }
  0xf1   : > { %671 = vmatprep.mubr.f32.mxu0 %v1331_v3  ;;  %832 = vmatprep.mubr.f32.mxu1 %v1331_v3 }
  0xf4   : > { %672 = vmatmul.mubr.f32.gmra.mxu0 %v440_v63  ;;  %833 = vmatmul.mubr.f32.gmra.mxu1 %v440_v63 }
  0xf5   : > { %677 = vmatprep.mubr.f32.mxu0 %v1331_v3  ;;  %838 = vmatprep.mubr.f32.mxu1 %v1331_v3 }
  0xf8   : > { %678 = vmatmul.mubr.f32.gmra.mxu0 %v441_v4  ;;  %839 = vmatmul.mubr.f32.gmra.mxu1 %v441_v4 }
  0xf9   : > { %683 = vmatprep.mubr.f32.mxu0 %v1331_v3  ;;  %844 = vmatprep.mubr.f32.mxu1 %v1331_v3  ;;  %v507_v3 = vld [vmem:[%s297_s11] sm:$0xf] }
  0xfa   : > { %v1660_v12 = vrot.slane %v507_v3, %v511_v8  ;;  %v1662_v13 = vrot.slane %v507_v3, %v519_v9  ;;  %v1664_v14 = vrot.slane %v507_v3, %v515_v10  ;;  %v1666_v15 = vrot.slane %v507_v3, %v523_v11 }
  0xfc   : > { %684 = vmatmul.mubr.f32.gmra.mxu0 %v442_v5  ;;  %845 = vmatmul.mubr.f32.gmra.mxu1 %v442_v5 }
 0x180   : > { %v595_v16 = vpop.f32.mrf.mxu0  ;;  %v756_v17 = vpop.f32.mrf.mxu1 }
 0x181   : > { %v596_v18 = vadd.f32 %v595_v16, %v1660_v12  ;;  %v757_v19 = vadd.f32 %v756_v17, %v1662_v13 }
 0x182   : > { %v597_v20 = vpop.f32.mrf.mxu0  ;;  %v758_v21 = vpop.f32.mrf.mxu1 }
 0x183   : > { %851 = vst [vmem:[%s1670_s24] sm:$0xff] %v596_v18  ;;  %853 = vst [vmem:[%s1670_s24 + $0x10] sm:$0xff] %v757_v19  ;;  %v598_v22 = vadd.f32 %v597_v20, %v1664_v14  ;;  %v759_v23 = vadd.f32 %v758_v21, %v1666_v15 }
 0x184   : > { %v601_v24 = vpop.f32.mrf.mxu0  ;;  %v762_v25 = vpop.f32.mrf.mxu1 }
 0x185   : > { %852 = vst [vmem:[%s1670_s24 + $0x8] sm:$0xff] %v598_v22  ;;  %854 = vst [vmem:[%s1670_s24 + $0x18] sm:$0xff] %v759_v23  ;;  %v602_v26 = vadd.f32 %v601_v24, %v1660_v12  ;;  %v763_v27 = vadd.f32 %v762_v25, %v1662_v13 }
 0x186   : > { %v603_v28 = vpop.f32.mrf.mxu0  ;;  %v764_v29 = vpop.f32.mrf.mxu1 }
 0x187   : > { %855 = vst [vmem:[%s1670_s24 + $0x20] sm:$0xff] %v602_v26  ;;  %857 = vst [vmem:[%s1670_s24 + $0x30] sm:$0xff] %v763_v27  ;;  %v604_v30 = vadd.f32 %v603_v28, %v1664_v14  ;;  %v765_v31 = vadd.f32 %v764_v29, %v1666_v15 }
 0x188   : > { %v607_v32 = vpop.f32.mrf.mxu0  ;;  %v768_v33 = vpop.f32.mrf.mxu1 }
 0x189   : > { %856 = vst [vmem:[%s1670_s24 + $0x28] sm:$0xff] %v604_v30  ;;  %858 = vst [vmem:[%s1670_s24 + $0x38] sm:$0xff] %v765_v31  ;;  %v608_v34 = vadd.f32 %v607_v32, %v1660_v12  ;;  %v769_v35 = vadd.f32 %v768_v33, %v1662_v13 }
 0x18a   : > { %v609_v36 = vpop.f32.mrf.mxu0  ;;  %v770_v37 = vpop.f32.mrf.mxu1 }
 0x18b   : > { %859 = vst [vmem:[%s1670_s24 + $0x40] sm:$0xff] %v608_v34  ;;  %861 = vst [vmem:[%s1670_s24 + $0x50] sm:$0xff] %v769_v35  ;;  %v610_v38 = vadd.f32 %v609_v36, %v1664_v14  ;;  %v771_v39 = vadd.f32 %v770_v37, %v1666_v15 }
 0x18c   : > { %v613_v40 = vpop.f32.mrf.mxu0  ;;  %v774_v41 = vpop.f32.mrf.mxu1 }
 0x18d   : > { %860 = vst [vmem:[%s1670_s24 + $0x48] sm:$0xff] %v610_v38  ;;  %862 = vst [vmem:[%s1670_s24 + $0x58] sm:$0xff] %v771_v39  ;;  %v614_v42 = vadd.f32 %v613_v40, %v1660_v12  ;;  %v775_v43 = vadd.f32 %v774_v41, %v1662_v13 }
 0x18e   : > { %v615_v44 = vpop.f32.mrf.mxu0  ;;  %v776_v45 = vpop.f32.mrf.mxu1 }
 0x18f   : > { %863 = vst [vmem:[%s1670_s24 + $0x60] sm:$0xff] %v614_v42  ;;  %865 = vst [vmem:[%s1670_s24 + $0x70] sm:$0xff] %v775_v43  ;;  %v616_v46 = vadd.f32 %v615_v44, %v1664_v14  ;;  %v777_v47 = vadd.f32 %v776_v45, %v1666_v15 }
 0x190   : > { %v619_v48 = vpop.f32.mrf.mxu0  ;;  %v780_v49 = vpop.f32.mrf.mxu1 }
 0x191   : > { %864 = vst [vmem:[%s1670_s24 + $0x68] sm:$0xff] %v616_v46  ;;  %866 = vst [vmem:[%s1670_s24 + $0x78] sm:$0xff] %v777_v47  ;;  %v620_v50 = vadd.f32 %v619_v48, %v1660_v12  ;;  %v781_v51 = vadd.f32 %v780_v49, %v1662_v13 }
 0x192   : > { %v621_v52 = vpop.f32.mrf.mxu0  ;;  %v782_v53 = vpop.f32.mrf.mxu1 }
 0x193   : > { %867 = vst [vmem:[%s1670_s24 + $0x80] sm:$0xff] %v620_v50  ;;  %869 = vst [vmem:[%s1670_s24 + $0x90] sm:$0xff] %v781_v51  ;;  %v622_v54 = vadd.f32 %v621_v52, %v1664_v14  ;;  %v783_v55 = vadd.f32 %v782_v53, %v1666_v15 }
 0x194   : > { %v625_v56 = vpop.f32.mrf.mxu0  ;;  %v786_v57 = vpop.f32.mrf.mxu1 }
 0x195   : > { %868 = vst [vmem:[%s1670_s24 + $0x88] sm:$0xff] %v622_v54  ;;  %870 = vst [vmem:[%s1670_s24 + $0x98] sm:$0xff] %v783_v55  ;;  %v626_v58 = vadd.f32 %v625_v56, %v1660_v12  ;;  %v787_v59 = vadd.f32 %v786_v57, %v1662_v13 }
 0x196   : > { %v627_v60 = vpop.f32.mrf.mxu0  ;;  %v788_v61 = vpop.f32.mrf.mxu1 }
 0x197   : > { %871 = vst [vmem:[%s1670_s24 + $0xa0] sm:$0xff] %v626_v58  ;;  %873 = vst [vmem:[%s1670_s24 + $0xb0] sm:$0xff] %v787_v59  ;;  %v628_v62 = vadd.f32 %v627_v60, %v1664_v14  ;;  %v789_v63 = vadd.f32 %v788_v61, %v1666_v15 }
 0x198   : > { %v631_v0 = vpop.f32.mrf.mxu0  ;;  %v792_v1 = vpop.f32.mrf.mxu1 }
 0x199   : > { %872 = vst [vmem:[%s1670_s24 + $0xa8] sm:$0xff] %v628_v62  ;;  %874 = vst [vmem:[%s1670_s24 + $0xb8] sm:$0xff] %v789_v63  ;;  %v632_v2 = vadd.f32 %v631_v0, %v1660_v12  ;;  %v793_v4 = vadd.f32 %v792_v1, %v1662_v13 }
 0x19a   : > { %v633_v5 = vpop.f32.mrf.mxu0  ;;  %v794_v6 = vpop.f32.mrf.mxu1 }
 0x19b   : > { %875 = vst [vmem:[%s1670_s24 + $0xc0] sm:$0xff] %v632_v2  ;;  %877 = vst [vmem:[%s1670_s24 + $0xd0] sm:$0xff] %v793_v4  ;;  %v634_v7 = vadd.f32 %v633_v5, %v1664_v14  ;;  %v795_v8 = vadd.f32 %v794_v6, %v1666_v15 }
 0x19c   : > { %v637_v9 = vpop.f32.mrf.mxu0  ;;  %v798_v3 = vpop.f32.mrf.mxu1 }
 0x19d   : > { %876 = vst [vmem:[%s1670_s24 + $0xc8] sm:$0xff] %v634_v7  ;;  %878 = vst [vmem:[%s1670_s24 + $0xd8] sm:$0xff] %v795_v8  ;;  %v638_v10 = vadd.f32 %v637_v9, %v1660_v12  ;;  %v799_v11 = vadd.f32 %v798_v3, %v1662_v13 }
 0x19e   : > { %v639_v16 = vpop.f32.mrf.mxu0  ;;  %v800_v17 = vpop.f32.mrf.mxu1 }
 0x19f   : > { %879 = vst [vmem:[%s1670_s24 + $0xe0] sm:$0xff] %v638_v10  ;;  %881 = vst [vmem:[%s1670_s24 + $0xf0] sm:$0xff] %v799_v11  ;;  %v640_v18 = vadd.f32 %v639_v16, %v1664_v14  ;;  %v801_v19 = vadd.f32 %v800_v17, %v1666_v15 }
 0x1a0   : > { %v643_v20 = vpop.f32.mrf.mxu0  ;;  %v804_v21 = vpop.f32.mrf.mxu1 }
 0x1a1   : > { %880 = vst [vmem:[%s1670_s24 + $0xe8] sm:$0xff] %v640_v18  ;;  %882 = vst [vmem:[%s1670_s24 + $0xf8] sm:$0xff] %v801_v19  ;;  %v644_v22 = vadd.f32 %v643_v20, %v1660_v12  ;;  %v805_v23 = vadd.f32 %v804_v21, %v1662_v13 }
 0x1a2   : > { %v645_v24 = vpop.f32.mrf.mxu0  ;;  %v806_v25 = vpop.f32.mrf.mxu1 }
 0x1a3   : > { %883 = vst [vmem:[%s1670_s24 + $0x100] sm:$0xff] %v644_v22  ;;  %885 = vst [vmem:[%s1670_s24 + $0x110] sm:$0xff] %v805_v23  ;;  %v646_v26 = vadd.f32 %v645_v24, %v1664_v14  ;;  %v807_v27 = vadd.f32 %v806_v25, %v1666_v15 }
 0x1a4   : > { %v649_v28 = vpop.f32.mrf.mxu0  ;;  %v810_v29 = vpop.f32.mrf.mxu1 }
 0x1a5   : > { %884 = vst [vmem:[%s1670_s24 + $0x108] sm:$0xff] %v646_v26  ;;  %886 = vst [vmem:[%s1670_s24 + $0x118] sm:$0xff] %v807_v27  ;;  %v650_v30 = vadd.f32 %v649_v28, %v1660_v12  ;;  %v811_v31 = vadd.f32 %v810_v29, %v1662_v13 }
 0x1a6   : > { %v651_v32 = vpop.f32.mrf.mxu0  ;;  %v812_v33 = vpop.f32.mrf.mxu1 }
 0x1a7   : > { %887 = vst [vmem:[%s1670_s24 + $0x120] sm:$0xff] %v650_v30  ;;  %889 = vst [vmem:[%s1670_s24 + $0x130] sm:$0xff] %v811_v31  ;;  %v652_v34 = vadd.f32 %v651_v32, %v1664_v14  ;;  %v813_v35 = vadd.f32 %v812_v33, %v1666_v15 }
 0x1a8   : > { %v655_v36 = vpop.f32.mrf.mxu0  ;;  %v816_v37 = vpop.f32.mrf.mxu1 }
 0x1a9   : > { %888 = vst [vmem:[%s1670_s24 + $0x128] sm:$0xff] %v652_v34  ;;  %890 = vst [vmem:[%s1670_s24 + $0x138] sm:$0xff] %v813_v35  ;;  %v656_v38 = vadd.f32 %v655_v36, %v1660_v12  ;;  %v817_v39 = vadd.f32 %v816_v37, %v1662_v13 }
 0x1aa   : > { %v657_v40 = vpop.f32.mrf.mxu0  ;;  %v818_v41 = vpop.f32.mrf.mxu1 }
 0x1ab   : > { %891 = vst [vmem:[%s1670_s24 + $0x140] sm:$0xff] %v656_v38  ;;  %893 = vst [vmem:[%s1670_s24 + $0x150] sm:$0xff] %v817_v39  ;;  %v658_v42 = vadd.f32 %v657_v40, %v1664_v14  ;;  %v819_v43 = vadd.f32 %v818_v41, %v1666_v15 }
 0x1ac   : > { %v661_v44 = vpop.f32.mrf.mxu0  ;;  %v822_v45 = vpop.f32.mrf.mxu1 }
 0x1ad   : > { %892 = vst [vmem:[%s1670_s24 + $0x148] sm:$0xff] %v658_v42  ;;  %894 = vst [vmem:[%s1670_s24 + $0x158] sm:$0xff] %v819_v43  ;;  %v662_v46 = vadd.f32 %v661_v44, %v1660_v12  ;;  %v823_v47 = vadd.f32 %v822_v45, %v1662_v13 }
 0x1ae   : > { %v663_v48 = vpop.f32.mrf.mxu0  ;;  %v824_v49 = vpop.f32.mrf.mxu1 }
 0x1af   : > { %895 = vst [vmem:[%s1670_s24 + $0x160] sm:$0xff] %v662_v46  ;;  %897 = vst [vmem:[%s1670_s24 + $0x170] sm:$0xff] %v823_v47  ;;  %v664_v50 = vadd.f32 %v663_v48, %v1664_v14  ;;  %v825_v51 = vadd.f32 %v824_v49, %v1666_v15 }
 0x1b0   : > { %v667_v52 = vpop.f32.mrf.mxu0  ;;  %v828_v53 = vpop.f32.mrf.mxu1 }
 0x1b1   : > { %896 = vst [vmem:[%s1670_s24 + $0x168] sm:$0xff] %v664_v50  ;;  %898 = vst [vmem:[%s1670_s24 + $0x178] sm:$0xff] %v825_v51  ;;  %v668_v54 = vadd.f32 %v667_v52, %v1660_v12  ;;  %v829_v55 = vadd.f32 %v828_v53, %v1662_v13 }
 0x1b2   : > { %v669_v56 = vpop.f32.mrf.mxu0  ;;  %v830_v57 = vpop.f32.mrf.mxu1 }
 0x1b3   : > { %899 = vst [vmem:[%s1670_s24 + $0x180] sm:$0xff] %v668_v54  ;;  %901 = vst [vmem:[%s1670_s24 + $0x190] sm:$0xff] %v829_v55  ;;  %v670_v58 = vadd.f32 %v669_v56, %v1664_v14  ;;  %v831_v59 = vadd.f32 %v830_v57, %v1666_v15 }
 0x1b4   : > { %v673_v60 = vpop.f32.mrf.mxu0  ;;  %v834_v61 = vpop.f32.mrf.mxu1 }
 0x1b5   : > { %900 = vst [vmem:[%s1670_s24 + $0x188] sm:$0xff] %v670_v58  ;;  %902 = vst [vmem:[%s1670_s24 + $0x198] sm:$0xff] %v831_v59  ;;  %v674_v62 = vadd.f32 %v673_v60, %v1660_v12  ;;  %v835_v63 = vadd.f32 %v834_v61, %v1662_v13 }
 0x1b6   : > { %v675_v0 = vpop.f32.mrf.mxu0  ;;  %v836_v1 = vpop.f32.mrf.mxu1 }
 0x1b7   : > { %903 = vst [vmem:[%s1670_s24 + $0x1a0] sm:$0xff] %v674_v62  ;;  %905 = vst [vmem:[%s1670_s24 + $0x1b0] sm:$0xff] %v835_v63  ;;  %v676_v2 = vadd.f32 %v675_v0, %v1664_v14  ;;  %v837_v4 = vadd.f32 %v836_v1, %v1666_v15 }
 0x1b8   : > { %v679_v5 = vpop.f32.mrf.mxu0  ;;  %v840_v6 = vpop.f32.mrf.mxu1 }
 0x1b9   : > { %904 = vst [vmem:[%s1670_s24 + $0x1a8] sm:$0xff] %v676_v2  ;;  %906 = vst [vmem:[%s1670_s24 + $0x1b8] sm:$0xff] %v837_v4  ;;  %v680_v7 = vadd.f32 %v679_v5, %v1660_v12  ;;  %v841_v8 = vadd.f32 %v840_v6, %v1662_v13 }
 0x1ba   : > { %v681_v9 = vpop.f32.mrf.mxu0  ;;  %v842_v3 = vpop.f32.mrf.mxu1 }
 0x1bb   : > { %907 = vst [vmem:[%s1670_s24 + $0x1c0] sm:$0xff] %v680_v7  ;;  %909 = vst [vmem:[%s1670_s24 + $0x1d0] sm:$0xff] %v841_v8  ;;  %v682_v10 = vadd.f32 %v681_v9, %v1664_v14  ;;  %v843_v11 = vadd.f32 %v842_v3, %v1666_v15 }
 0x1bc   : > { %v685_v16 = vpop.f32.mrf.mxu0  ;;  %v846_v17 = vpop.f32.mrf.mxu1 }
 0x1bd   : > { %908 = vst [vmem:[%s1670_s24 + $0x1c8] sm:$0xff] %v682_v10  ;;  %910 = vst [vmem:[%s1670_s24 + $0x1d8] sm:$0xff] %v843_v11  ;;  %v686_v18 = vadd.f32 %v685_v16, %v1660_v12  ;;  %v847_v19 = vadd.f32 %v846_v17, %v1662_v13 }
 0x1be   : > { %v687_v20 = vpop.f32.mrf.mxu0  ;;  %v848_v21 = vpop.f32.mrf.mxu1 }
 0x1bf   : > { %911 = vst [vmem:[%s1670_s24 + $0x1e0] sm:$0xff] %v686_v18  ;;  %913 = vst [vmem:[%s1670_s24 + $0x1f0] sm:$0xff] %v847_v19  ;;  %v688_v22 = vadd.f32 %v687_v20, %v1664_v14  ;;  %v849_v12 = vadd.f32 %v848_v21, %v1666_v15 }
 0x1c1   : > { %912 = vst [vmem:[%s1670_s24 + $0x1e8] sm:$0xff] %v688_v22  ;;  %914 = vst [vmem:[%s1670_s24 + $0x1f8] sm:$0xff] %v849_v12 }
 0x1c2   : > { %1217 = shalt.err (!%p1214_p0)
}
 0x1c3   : > { %s1218_s23 = scalar_lea.hbm %s1798_s30, 8192  ;;  %s1222_s13 = scalar_lea.hbm %s1875_s5, 32768 }
 0x1c4   : > { %p1219_p3 = scmp.ne.s32.totalorder %s1798_s30, %s1218_s23  ;;  %p1223_p4 = scmp.lt.s32.totalorder %s1798_s30, %s1875_s5 }
 0x1c5   : > { %p1224_p8 = scmp.lt.s32.totalorder %s1222_s13, %s1218_s23 }
 0x1c6   : > { %p1220_p1 = pnand %p1219_p3, %p1456_p13 }
 0x1c7   : > { %p1225_p6 = por %p1224_p8, %p1223_p4 }
 0x1c8   : > { %p1221_p5 = pneg %p1220_p1 }
 0x1ca   : > { %p1226_p7 = pnand %p1225_p6, %p1221_p5 }
 0x1cc   : > { %1229 = shalt.err (!%p1226_p7)
}
 0x1cd   : > { %s1333_s14 = smov 512   ;;  %s1334_s25 = smov 1024  }
 0x1ce   : > { %s1335_s15 = smov 32  }
 0x1cf   : > { %1066 = dma.vmem_to_hbm [thread:$0]  (%p1456_p13), %s1800_s29, 8192, %s1798_s30, %s1810_s7, %s1333_s14, %s1334_s25, %s1335_s15  }
 0x1d0 PF: > { %p1077_p9 = scmp.ge.s32.totalorder %s1324_s28, 2  ;;  %s947_s12 = sand.u32 1, %s1284_s18  }
 0x1d1   : > { %s948_s6 = scalar_lea.sflag [#allocation4], %s947_s12 }
 0x1d2   : > { %p1073_p10 = pnand %p1077_p9, %p1461_p2 }
 0x1d4   : > { %p1074_p11 = pneg %p1073_p10 }
 0x1d6   : > { %1279 = dma.done.wait (%p1074_p11), %s948_s6, 8192  }
 0x1d7   : > { %1281 = vsyncadd (%p1074_p11), %s948_s6, 4294959104  ;;  %s21_s28 = sadd.s32 1, %s1324_s28   ;;  %s1892_s17 = sld [smem:[#allocation8_spill]] }
 0x1d8   : > { %p18_p12 = scmp.ge.s32.totalorder %s21_s28, 6   ;;  %s1893_s23 = sld [smem:[#allocation13_spill]] }
 0x1d9   : > { %s1894_s24 = sld [smem:[#allocation9_spill]]  ;;  %s1898_s18 = smov %s1288_s19 }
 0x1da   : > { %s1895_s25 = sld [smem:[#allocation10_spill]]  ;;  %s1899_s19 = smov %s1292_s20 }
 0x1db   : > { %s1896_s26 = sld [smem:[#allocation11_spill]]  ;;  %s1900_s20 = smov %s1454_s16 }
 0x1dc   : > { %s1897_s27 = sld [smem:[#allocation12_spill]]  ;;  %s1901_s21 = smov %s1300_s22 }
 0x1dd   : > { %s1902_s22 = smov %s1892_s17  ;;  %20 = sbr.rel (!%p18_p12) target bundleno = 9 (0x9), region = 91 }
 0x1e2   :  { %953 = vsyncpa [#allocation3], 1 }
 0x1e3   :  { %955 = vsyncpa [#allocation3 + $0x1], 1 }
 0x1e4   :  { %956 = vsyncpa [#allocation4], 1 }
 0x1e5   :  { %958 = vsyncpa [#allocation4 + $0x1], 1 }

</bundles_post_ra>
